<compile_context>
chip_gen: v6e
topology: v6e:2x2x1
jax: 0.10.0
libtpu: 0.0.40
codegen_flags: <defaults>
</compile_context>

<pallas_src>
import functools

import jax
import jax.numpy as jnp
from jax import lax
from jax.experimental import pallas as pl
from jax.experimental.pallas import tpu as pltpu

_LANES = 128


def _mse_kernel(pred_ref, real_ref, o_ref, acc_ref, *, n, blocks_per_split,
                mask_needed):
    split = pl.program_id(0)   # "parallel" axis (TensorCore split on v7x)
    step = pl.program_id(1)    # "arbitrary" reduction axis
    br, lanes = pred_ref.shape
    block_elems = br * lanes

    @pl.when(step == 0)
    def _():
        acc_ref[...] = jnp.zeros_like(acc_ref)

    def _accumulate(apply_mask):
        # Upcast per tile: HBM traffic stays in the caller's dtype,
        # accumulation stays in f32.
        d = real_ref[...].astype(jnp.float32) - pred_ref[...].astype(jnp.float32)
        if apply_mask:
            start = (split * blocks_per_split + step) * block_elems
            row = lax.broadcasted_iota(jnp.int32, (br, lanes), 0)
            lane = lax.broadcasted_iota(jnp.int32, (br, lanes), 1)
            d = jnp.where(row * lanes + lane < n - start, d, 0.0)
        d2 = d * d
        # (br,128) -> (br//8, 8, 128) is tile-aligned (free); reducing axis 0 is
        # pure elementwise vreg adds on the VPU -- no per-step cross-lane XLU.
        acc_ref[...] += jnp.sum(d2.reshape(br // 8, 8, lanes), axis=0)

    if mask_needed:
        start = (split * blocks_per_split + step) * block_elems
        is_full = start + block_elems <= n

        @pl.when(is_full)
        def _():
            _accumulate(False)

        @pl.when(jnp.logical_not(is_full))
        def _():
            _accumulate(True)
    else:
        _accumulate(False)

    @pl.when(step == pl.num_programs(1) - 1)
    def _():
        # Single lane-dense (8,128) partial-sum store per split.
        o_ref[0] = acc_ref[...]


def mse_loss(pred, real, *, block_rows=4096, num_splits=2):
    """Pallas implementation of MSE.forward(pred, real) -> scalar f32."""
    assert pred.shape == real.shape, (pred.shape, real.shape)
    n = pred.size          # static Python int
    assert n > 0

    p_flat = pred.reshape(-1)
    r_flat = real.reshape(-1)

    rows = pl.cdiv(n, _LANES)
    padded = rows * _LANES
    if padded != n:
        # Rare path: numel not a multiple of 128. Pad by < 128 elements (the
        # only case that materializes an extra HBM copy); the in-kernel mask
        # also covers these (zero) elements.
        p_flat = jnp.pad(p_flat, (0, padded - n))
        r_flat = jnp.pad(r_flat, (0, padded - n))
    p2d = p_flat.reshape(rows, _LANES)
    r2d = r_flat.reshape(rows, _LANES)

    # Sublane multiple of the narrowest input dtype (f32: 8, bf16: 16, int8: 32).
    min_itemsize = min(jnp.dtype(p2d.dtype).itemsize, jnp.dtype(r2d.dtype).itemsize)
    mult = max(8, 32 // max(1, min_itemsize))
    br = max(1, min(block_rows, rows))
    br = ((br + mult - 1) // mult) * mult

    num_blocks = pl.cdiv(rows, br)
    ns = num_splits if num_blocks >= num_splits else 1
    bpc = pl.cdiv(num_blocks, ns)           # row blocks per split
    block_elems = br * _LANES
    # True iff some grid step's nominal [start, start + block_elems) range
    # extends past n (partial last block, or clamped block on an uneven split).
    mask_needed = (ns * bpc * block_elems != n)
    if mask_needed:
        assert n < 2 ** 31, "in-kernel element offsets use int32"

    def in_map(c, i):
        # Clamp so a split's trailing out-of-range blocks re-read the last
        # valid block; their contribution is masked to zero in-kernel.
        return (jnp.minimum(c * bpc + i, num_blocks - 1), 0)

    kernel = functools.partial(
        _mse_kernel, n=n, blocks_per_split=bpc, mask_needed=mask_needed)

    partials = pl.pallas_call(
        kernel,
        out_shape=jax.ShapeDtypeStruct((ns, 8, _LANES), jnp.float32),
        grid_spec=pltpu.PrefetchScalarGridSpec(
            num_scalar_prefetch=0,
            grid=(ns, bpc),
            in_specs=[
                pl.BlockSpec((br, _LANES), in_map),
                pl.BlockSpec((br, _LANES), in_map),
            ],
            out_specs=pl.BlockSpec((1, 8, _LANES), lambda c, i: (c, 0, 0)),
            scratch_shapes=[pltpu.VMEM((8, _LANES), jnp.float32)],
        ),
        compiler_params=pltpu.CompilerParams(
            dimension_semantics=("parallel", "arbitrary"),
        ),
    )(p2d, r2d)

    # Tiny cross-split / cross-lane combine + 1/n scale (<= 2*8*128 f32 elems).
    return jnp.sum(partials) / n


def _reference_mse(pred, real):
    d = real.astype(jnp.float32) - pred.astype(jnp.float32)
    return jnp.sum(d * d) / d.size


if __name__ == "__main__":
    key = jax.random.PRNGKey(0)
    k1, k2, k3, k4 = jax.random.split(key, 4)

    # Primary case from the module spec: NCHW batch=2, channels=4, spatial 16x16.
    pred = jax.random.normal(k1, (2, 4, 16, 16), dtype=jnp.float32)
    real = jax.random.normal(k2, (2, 4, 16, 16), dtype=jnp.float32)
    loss = mse_loss(pred, real)
    jax.block_until_ready(loss)
    assert jnp.allclose(loss, _reference_mse(pred, real), atol=1e-5, rtol=1e-5), loss

    # Ragged size (numel % 128 != 0): exercises the in-kernel tail mask.
    p2 = jax.random.normal(k3, (3, 50, 17), dtype=jnp.float32)
    r2 = jax.random.normal(k4, (3, 50, 17), dtype=jnp.float32)
    loss2 = mse_loss(p2, r2)
    jax.block_until_ready(loss2)
    assert jnp.allclose(loss2, _reference_mse(p2, r2), atol=1e-5, rtol=1e-5), loss2

    # Multi-block, two-way split with an uneven block count (clamped-block path).
    p3 = jax.random.normal(k1, (2, 4, 64, 64), dtype=jnp.float32)
    r3 = jax.random.normal(k2, (2, 4, 64, 64), dtype=jnp.float32)
    loss3 = mse_loss(p3, r3, block_rows=96)
    jax.block_until_ready(loss3)
    assert jnp.allclose(loss3, _reference_mse(p3, r3), atol=1e-5, rtol=1e-5), loss3

    # bf16 inputs: exercises the 16-row sublane multiple + in-kernel f32 upcast.
    p4 = jax.random.normal(k3, (2, 4, 16, 16), dtype=jnp.bfloat16)
    r4 = jax.random.normal(k4, (2, 4, 16, 16), dtype=jnp.bfloat16)
    loss4 = mse_loss(p4, r4)
    jax.block_until_ready(loss4)
    assert jnp.allclose(loss4, _reference_mse(p4, r4), atol=1e-5, rtol=1e-5), loss4

    print("KERNEL_OK")
</pallas_src>

<mosaic_0001>
module attributes {stable_mosaic.version = 11 : i64} {
  func.func @_mse_kernel(%arg0: i32, %arg1: i32, %arg2: memref<16x128xf32, #tpu.memory_space<vmem>>, %arg3: memref<16x128xf32, #tpu.memory_space<vmem>>, %arg4: memref<1x8x128xf32, #tpu.memory_space<vmem>>, %arg5: memref<8x128xf32, #tpu.memory_space<vmem>>) attributes {dimension_semantics = [#tpu.dimension_semantics<parallel>, #tpu.dimension_semantics<arbitrary>], iteration_bounds = array<i64: 1, 1>, scalar_prefetch = 0 : i64, scratch_operands = 1 : i64, tpu.core_type = #tpu.core_type<tc>, window_params = [{transform_indices = @transform_0, window_bounds = array<i64: 16, 128>}, {transform_indices = @transform_1, window_bounds = array<i64: 16, 128>}, {transform_indices = @transform_2, window_bounds = array<i64: 1, 8, 128>}]} {
    %c0_i32 = arith.constant 0 : i32
    %0 = arith.cmpi eq, %arg1, %c0_i32 : i32
    %1 = arith.extui %0 : i1 to i32
    %c0_i32_0 = arith.constant 0 : i32
    %2 = arith.cmpi ne, %1, %c0_i32_0 : i32
    scf.if %2 {
      %cst_10 = arith.constant 0.000000e+00 : f32
      %15 = vector.broadcast %cst_10 : f32 to vector<8x128xf32>
      %c0_11 = arith.constant 0 : index
      %c0_12 = arith.constant 0 : index
      %16 = vector.load %arg5[%c0_11, %c0_12] : memref<8x128xf32, #tpu.memory_space<vmem>>, vector<8x128xf32>
      tpu.vector_store %arg5[%c0_11, %c0_12], %15 {strides = array<i32>} : memref<8x128xf32, #tpu.memory_space<vmem>>, vector<8x128xf32>,
    } else {
    }
    %c0 = arith.constant 0 : index
    %c0_1 = arith.constant 0 : index
    %3 = vector.load %arg3[%c0, %c0_1] : memref<16x128xf32, #tpu.memory_space<vmem>>, vector<16x128xf32>
    %c0_2 = arith.constant 0 : index
    %c0_3 = arith.constant 0 : index
    %4 = vector.load %arg2[%c0_2, %c0_3] : memref<16x128xf32, #tpu.memory_space<vmem>>, vector<16x128xf32>
    %5 = arith.subf %3, %4 : vector<16x128xf32>
    %6 = arith.mulf %5, %5 : vector<16x128xf32>
    %c0_4 = arith.constant 0 : index
    %c0_5 = arith.constant 0 : index
    %7 = vector.load %arg5[%c0_4, %c0_5] : memref<8x128xf32, #tpu.memory_space<vmem>>, vector<8x128xf32>
    %8 = vector.shape_cast %6 : vector<16x128xf32> to vector<2x8x128xf32>
    %cst = arith.constant dense<0.000000e+00> : vector<8x128xf32>
    %9 = vector.multi_reduction <add>, %8, %cst [0] : vector<2x8x128xf32> to vector<8x128xf32>
    %10 = arith.addf %7, %9 : vector<8x128xf32>
    %c0_6 = arith.constant 0 : index
    %c0_7 = arith.constant 0 : index
    %11 = vector.load %arg5[%c0_6, %c0_7] : memref<8x128xf32, #tpu.memory_space<vmem>>, vector<8x128xf32>
    tpu.vector_store %arg5[%c0_6, %c0_7], %10 {strides = array<i32>} : memref<8x128xf32, #tpu.memory_space<vmem>>, vector<8x128xf32>,
    %c0_i32_8 = arith.constant 0 : i32
    %12 = arith.cmpi eq, %arg1, %c0_i32_8 : i32
    %13 = arith.extui %12 : i1 to i32
    %c0_i32_9 = arith.constant 0 : i32
    %14 = arith.cmpi ne, %13, %c0_i32_9 : i32
    scf.if %14 {
      %c0_10 = arith.constant 0 : index
      %c0_11 = arith.constant 0 : index
      %15 = vector.load %arg5[%c0_10, %c0_11] : memref<8x128xf32, #tpu.memory_space<vmem>>, vector<8x128xf32>
      %c0_12 = arith.constant 0 : index
      %c0_13 = arith.constant 0 : index
      %c0_14 = arith.constant 0 : index
      %16 = vector.load %arg4[%c0_12, %c0_13, %c0_14] : memref<1x8x128xf32, #tpu.memory_space<vmem>>, vector<1x8x128xf32>
      %17 = vector.shape_cast %16 : vector<1x8x128xf32> to vector<8x128xf32>
      %18 = vector.shape_cast %15 : vector<8x128xf32> to vector<1x8x128xf32>
      tpu.vector_store %arg4[%c0_12, %c0_13, %c0_14], %18 {strides = array<i32>} : memref<1x8x128xf32, #tpu.memory_space<vmem>>, vector<1x8x128xf32>,
    } else {
    }
    return
  }
  func.func @transform_0(%arg0: i32, %arg1: i32) -> (i32, i32) {
    %c1_i32 = arith.constant 1 : i32
    %0 = arith.muli %arg0, %c1_i32 : i32
    %1 = arith.addi %0, %arg1 : i32
    %c0_i32 = arith.constant 0 : i32
    %2 = arith.minsi %1, %c0_i32 : i32
    %c0_i32_0 = arith.constant 0 : i32
    %c0_i32_1 = arith.constant 0 : i32
    return %2, %c0_i32_0 : i32, i32
  }
  func.func @transform_1(%arg0: i32, %arg1: i32) -> (i32, i32) {
    %c1_i32 = arith.constant 1 : i32
    %0 = arith.muli %arg0, %c1_i32 : i32
    %1 = arith.addi %0, %arg1 : i32
    %c0_i32 = arith.constant 0 : i32
    %2 = arith.minsi %1, %c0_i32 : i32
    %c0_i32_0 = arith.constant 0 : i32
    %c0_i32_1 = arith.constant 0 : i32
    return %2, %c0_i32_0 : i32, i32
  }
  func.func @transform_2(%arg0: i32, %arg1: i32) -> (i32, i32, i32) {
    %c0_i32 = arith.constant 0 : i32
    %c0_i32_0 = arith.constant 0 : i32
    %c0_i32_1 = arith.constant 0 : i32
    return %arg0, %c0_i32, %c0_i32_0 : i32, i32, i32
  }
}

</mosaic_0001>

<bundles_post_ra>
// kernel: tpu_custom_call.1
= control target key start
LH: loop header
LB: loop body
LE: loop exit
PB: predicated region body
PF: predicated region fallthrough
CT: control target
= control target key end

     0   :  { %7 = vsyncpa [#allocation4], 0  ;;  %s202_s0 = inlined_call_operand.hbm [shape: f32[16,128], index: 0, kind: input, shape index: {}]   ;;  %s203_s1 = inlined_call_operand.hbm [shape: f32[16,128], index: 1, kind: input, shape index: {}]   ;;  %s204_s2 = inlined_call_operand.hbm [shape: f32[1,8,128], index: 2, kind: output, shape index: {}]  }
   0x1   :  { %8 = vsyncpa [#allocation7], 0 }
   0x2   :  { %9 = vsyncpa [#allocation5], 0  ;;  %s173_s9 = smov [#allocation3]  }
   0x3   :  { %s21_s10 = sshll.u32 %s173_s9, 4  ;;  %s22_s10 = int_to_ptr.vmem [resolvable:$true] %s21_s10 }
   0x4   :  { %s115_s11 = scalar_lea.vmem %s22_s10, 256  ;;  %p120_p1 = scmp.lt.s32.totalorder %s22_s10, %s22_s10 }
   0x5   :  { %p116_p0 = scmp.ne.s32.totalorder %s22_s10, %s115_s11  ;;  %p121_p2 = scmp.lt.s32.totalorder %s115_s11, %s115_s11 }
   0x7   :  { %p122_p3 = por %p121_p2, %p120_p1 }
   0x9   :  { %p123_p4 = pnand %p122_p3, %p116_p0 }
   0xb   :  { %126 = shalt.err (!%p123_p4)
}
   0xc   :  { %s174_s12 = smov 128   ;;  %s175_s13 = smov 8  }
   0xd   :  { %27 = dma.hbm_to_vmem [thread:$0]  %s202_s0, 256, %s22_s10, [#allocation4], %s174_s12, %s174_s12, %s175_s13  }
   0xe   :  { %s176_s16 = smov [#allocation6]  }
   0xf   :  { %s39_s17 = sshll.u32 %s176_s16, 4  ;;  %s40_s17 = int_to_ptr.vmem [resolvable:$true] %s39_s17 }
  0x10   :  { %s135_s18 = scalar_lea.vmem %s40_s17, 256  ;;  %p140_p6 = scmp.lt.s32.totalorder %s40_s17, %s40_s17 }
  0x11   :  { %p136_p5 = scmp.ne.s32.totalorder %s40_s17, %s135_s18  ;;  %p141_p7 = scmp.lt.s32.totalorder %s135_s18, %s135_s18 }
  0x13   :  { %p142_p8 = por %p141_p7, %p140_p6 }
  0x15   :  { %p143_p9 = pnand %p142_p8, %p136_p5 }
  0x17   :  { %146 = shalt.err (!%p143_p9)
}
  0x18   :  { %45 = dma.hbm_to_vmem [thread:$0]  %s203_s1, 256, %s40_s17, [#allocation7], %s174_s12, %s174_s12, %s175_s13  }
  0x19   :  { %167 = dma.done.wait [#allocation4], 256  }
  0x1a   :  { %168 = vsyncadd [#allocation4], 4294967040 }
  0x1b   :  { %169 = dma.done.wait [#allocation7], 256  }
  0x1c   :  { %170 = vsyncadd [#allocation7], 4294967040  ;;  %v65_v0 = vld [vmem:[#allocation6] sm:$0xff]  ;;  %v66_v1 = vld [vmem:[#allocation6 + $0x8] sm:$0xff]  ;;  %s177_s0 = smov [#allocation8]  }
  0x1d   :  { %v67_v2 = vld [vmem:[#allocation3] sm:$0xff]  ;;  %v68_v3 = vld [vmem:[#allocation3 + $0x8] sm:$0xff]  ;;  %s88_s21 = sshll.u32 %s177_s0, 4  ;;  %s89_s21 = int_to_ptr.vmem [resolvable:$true] %s88_s21 }
  0x1e   :  { %v69_v4 = vsub.f32 %v65_v0, %v67_v2  ;;  %v70_v5 = vsub.f32 %v66_v1, %v68_v3  ;;  %s147_s22 = scalar_lea.vmem %s89_s21, 128  ;;  %p152_p11 = scmp.lt.s32.totalorder %s89_s21, %s89_s21 }
  0x1f   :  { %p148_p10 = scmp.ne.s32.totalorder %s89_s21, %s147_s22  ;;  %p153_p12 = scmp.lt.s32.totalorder %s147_s22, %s147_s22 }
  0x20   :  { %v71_v6 = vmul.f32 %v69_v4, %v69_v4  ;;  %v72_v7 = vmul.f32 %v70_v5, %v70_v5 }
  0x21   :  { %p154_p13 = por %p153_p12, %p152_p11 }
  0x22   :  { %v74_v8 = vadd.f32 %v72_v7, %v71_v6 }
  0x23   :  { %p155_p0 = pnand %p154_p13, %p148_p10 }
  0x24   :  { %81 = vst [vmem:[#allocation8] sm:$0xff] %v74_v8 }
  0x25   :  { %158 = shalt.err (!%p155_p0)
}
  0x26   :  { %91 = dma.vmem_to_hbm [thread:$0]  %s89_s21, 128, %s204_s2, [#allocation5]  }
  0x27   :  { %171 = dma.done.wait [#allocation5], 128  }
  0x28   :  { %172 = vsyncadd [#allocation5], 4294967168 }
  0x29   :  { %95 = vsyncpa [#allocation4], 1 }
  0x2a   :  { %96 = vsyncpa [#allocation7], 1 }
  0x2b   :  { %97 = vsyncpa [#allocation5], 1 }

</bundles_post_ra>
